<compile_context>
chip_gen: v6e
topology: v6e:2x2x1
jax: 0.10.0
libtpu: 0.0.40
codegen_flags: <defaults>
</compile_context>

<pallas_src>
import functools

import jax
import jax.numpy as jnp
from jax import lax
from jax.experimental import pallas as pl
from jax.experimental.pallas import tpu as pltpu


# ---------------------------------------------------------------------------
# Kernel
# ---------------------------------------------------------------------------
def _linear_kernel(x_ref, w_ref, o_ref, *scratch, tk, n_k, w_transposed):
    """One (tm, tn) output tile of  out = x @ W.T  (nn.Linear, no bias).

    x_ref : (tm, K)   full-K activation stripe, resident across the j and k axes
    w_ref : (tn, tk)  weight tile in nn.Linear (out, in) layout, or
            (tk, tn)  pre-transposed (in, out) layout when w_transposed=True
    o_ref : (tm, tn)  output tile, resident across the K grid axis
    scratch: optionally (acc_ref,) f32 accumulator (only when n_k > 1 and the
             output dtype is not f32)
    """
    if n_k == 1:
        x_blk = x_ref[...]
    else:
        k = pl.program_id(2)
        start = pl.multiple_of(k * tk, tk)
        x_blk = x_ref[:, pl.ds(start, tk)]

    # Contract K with K: (tm,tk) x (tn,tk) -> (tm,tn)  (native nn.Linear layout),
    # or the canonical (tm,tk) x (tk,tn) form for a pre-transposed weight.
    dnums = (((1,), (0,)), ((), ())) if w_transposed else (((1,), (1,)), ((), ()))
    part = lax.dot_general(
        x_blk, w_ref[...], dimension_numbers=dnums,
        preferred_element_type=jnp.float32,
    )

    if n_k == 1:
        # Single K block: no accumulator needed at all.
        o_ref[...] = part.astype(o_ref.dtype)
    else:
        k = pl.program_id(2)
        if scratch:
            acc_ref = scratch[0]

            @pl.when(k == 0)
            def _():
                acc_ref[...] = jnp.zeros_like(acc_ref)

            acc_ref[...] += part

            @pl.when(k == n_k - 1)
            def _():
                o_ref[...] = acc_ref[...].astype(o_ref.dtype)
        else:
            # f32 output: accumulate straight into the resident output block.
            @pl.when(k == 0)
            def _():
                o_ref[...] = jnp.zeros_like(o_ref)

            o_ref[...] += part


# ---------------------------------------------------------------------------
# Tiling / VMEM budgeting
# ---------------------------------------------------------------------------
_K_TILE_CANDIDATES = (2048, 1536, 1024, 768, 512, 384, 256, 128)
_M_TILE_CANDIDATES = (2048, 1024, 512, 256, 128, 64, 32, 16, 8)
_N_TILE_CANDIDATES = (512, 384, 256, 128)


def _vmem_budget_bytes():
    # Generation-aware scratch budget: ~3/4 of physical VMEM, capped at 96 MiB.
    #   v5e / v6e: 128 MiB physical -> 96 MiB budget
    #   v7x      :  64 MiB physical -> 48 MiB budget
    try:
        cap = int(pltpu.get_tpu_info().vmem_capacity_bytes)
    except Exception:
        cap = 64 << 20  # conservative default (v7x per-core VMEM)
    return int(min(cap * 3 // 4, 96 << 20))


def _pick_k_tile(K):
    if K <= 2048:
        return K
    for cand in _K_TILE_CANDIDATES:
        if K % cand == 0:
            return cand
    # Awkward K with no 128-aligned divisor: a single full-K block, so the
    # reduction never sees padded (garbage) K elements.  tm/tn are shrunk in
    # _select_tiles so the footprint still fits the VMEM budget.
    # TODO(synk): in-kernel K-tail masking would restore K-axis pipelining here.
    return K


def _pick_n_tile(N):
    if N <= 128:
        return N                                # full-dim lane block (always legal)
    if N <= 512:
        return N if N % 128 == 0 else 128       # keep stores lane-dense (unmasked)
    return 512


def _select_tiles(M, N, K, in_bytes, out_bytes, budget):
    tk = _pick_k_tile(K)
    n_k = pl.cdiv(K, tk)

    def footprint(tm, tn):
        acc = tm * tn * 4 if n_k > 1 else 0     # conservative (scratch may be dropped)
        return (2 * tm * K * in_bytes           # resident x stripe (double-buffered)
                + 2 * tn * tk * in_bytes        # streamed weight tile
                + 2 * tm * tn * out_bytes       # output tile
                + acc)

    tn0 = _pick_n_tile(N)
    tn_opts = [tn0] + [t for t in _N_TILE_CANDIDATES if t < tn0]
    for tn in tn_opts:
        for c in _M_TILE_CANDIDATES:
            tm = M if c >= M else c             # full-dim block, or a multiple of 8
            if footprint(tm, tn) <= budget:
                return tm, tn, tk, footprint(tm, tn)
    # Fallback (pathological shapes): smallest tiles, correctness first.
    tm = M if M <= 8 else 8
    tn = tn_opts[-1]
    return tm, tn, tk, footprint(tm, tn)


# ---------------------------------------------------------------------------
# Public API
# ---------------------------------------------------------------------------
def prepare_weight(weight, *, compute_dtype=jnp.bfloat16, transpose=True):
    """One-time (cache the result!) weight preparation for generater_forward.

    Casts the nn.Linear weight (output_dim, d_model) to the MXU compute dtype
    (bf16 recommended: all of v5e/v6e/v7x MXU peak rates are bf16 rates) and
    optionally pre-transposes it to (d_model, output_dim) so the in-kernel
    contraction is the canonical MXU form with no layout fixups.  Pass the
    result to generater_forward with weight_is_transposed=transpose.
    """
    w = weight if compute_dtype is None else weight.astype(compute_dtype)
    return w.T if transpose else w


def generater_forward(enc, weight, *, weight_is_transposed=False,
                      compute_dtype=None, force_pallas=False):
    """Pallas equivalent of `Generater.forward`: enc @ W.T (bias-free Linear).

    enc:    (..., d_model)
    weight: (output_dim, d_model)  nn.Linear layout, or (d_model, output_dim)
            when weight_is_transposed=True (see prepare_weight).
    compute_dtype: MXU operand dtype.  Default None means "use the stored
        weight dtype" -- store the weight in bf16 via prepare_weight() to get
        the bf16 MXU fast path with zero per-call weight casts.  Accumulation
        is always f32; the output keeps enc.dtype.
    force_pallas: skip the tiny-problem jnp.dot dispatch (used by the demo).
    """
    if weight.ndim != 2:
        raise ValueError(f"weight must be 2-D, got shape {weight.shape}")
    d_model = enc.shape[-1]
    if weight_is_transposed:
        if weight.shape[0] != d_model:
            raise ValueError(f"transposed weight must be ({d_model}, out), got {weight.shape}")
        output_dim = weight.shape[1]
    else:
        if weight.shape[1] != d_model:
            raise ValueError(f"weight must be (out, {d_model}), got {weight.shape}")
        output_dim = weight.shape[0]

    lead_shape = enc.shape[:-1]
    out_dtype = enc.dtype
    x = enc.reshape(-1, d_model)
    M, K, N = x.shape[0], d_model, output_dim

    # Operand dtype for the MXU: default to the stored weight dtype so a
    # pre-cast (bf16) weight is consumed as-is with no per-call cast.
    op_dtype = jnp.dtype(weight.dtype) if compute_dtype is None else jnp.dtype(compute_dtype)
    if x.dtype != op_dtype:
        x = x.astype(op_dtype)
    if weight.dtype != op_dtype:
        # Per-call weight cast: avoid at realistic sizes -- pre-cast once with
        # prepare_weight() and pass the cached array instead.
        weight = weight.astype(op_dtype)

    # Tiny problems: one fused XLA matmul beats grid-step overhead + heavily
    # padded MXU pushes.
    if not force_pallas and (N < 128 or M * N * K < (1 << 21)):
        w2 = weight if weight_is_transposed else weight.T
        out = jnp.dot(x, w2, preferred_element_type=jnp.float32).astype(out_dtype)
        return out.reshape(*lead_shape, N)

    in_bytes = op_dtype.itemsize
    out_bytes = jnp.dtype(out_dtype).itemsize
    budget = _vmem_budget_bytes()
    tm, tn, tk, vmem_need = _select_tiles(M, N, K, in_bytes, out_bytes, budget)
    n_k = pl.cdiv(K, tk)
    grid = (pl.cdiv(M, tm), pl.cdiv(N, tn), n_k)

    if weight_is_transposed:
        w_spec = pl.BlockSpec((tk, tn), lambda i, j, k: (k, j))
    else:
        w_spec = pl.BlockSpec((tn, tk), lambda i, j, k: (j, k))

    # Scratch accumulator only when K is tiled AND the output is not already
    # an f32 buffer we can accumulate into.
    needs_scratch = n_k > 1 and jnp.dtype(out_dtype) != jnp.dtype(jnp.float32)
    scratch = [pltpu.VMEM((tm, tn), jnp.float32)] if needs_scratch else []

    vmem_limit = int(min(max(vmem_need * 5 // 4 + (2 << 20), 16 << 20), budget))
    vmem_limit = int(max(vmem_limit, vmem_need + (2 << 20)))

    cost = pl.CostEstimate(
        flops=2 * M * K * N,
        transcendentals=0,
        bytes_accessed=int(M * K * in_bytes                # activations streamed once
                           + grid[0] * N * K * in_bytes    # weight re-streamed per M tile
                           + M * N * out_bytes),
    )

    kernel = functools.partial(
        _linear_kernel, tk=tk, n_k=n_k, w_transposed=weight_is_transposed)

    out = pl.pallas_call(
        kernel,
        out_shape=jax.ShapeDtypeStruct((M, N), out_dtype),
        grid_spec=pltpu.PrefetchScalarGridSpec(
            num_scalar_prefetch=0,
            grid=grid,
            in_specs=[
                # Full-K activation stripe: index depends only on i, so it is
                # DMA'd once per M tile and stays resident across j and k.
                pl.BlockSpec((tm, K), lambda i, j, k: (i, 0)),
                w_spec,
            ],
            out_specs=pl.BlockSpec((tm, tn), lambda i, j, k: (i, j)),
            scratch_shapes=scratch,
        ),
        compiler_params=pltpu.CompilerParams(
            # Only the N (output/vocab) axis is parallel: a v7x megacore split
            # lands on N so each TensorCore streams half the weight.  M stays
            # sequential, preserving the activation-stripe residency.
            dimension_semantics=("arbitrary", "parallel", "arbitrary"),
            vmem_limit_bytes=vmem_limit,
        ),
        cost_estimate=cost,
    )(x, weight)

    return out.reshape(*lead_shape, N)


# ---------------------------------------------------------------------------
# Demo / correctness check
# ---------------------------------------------------------------------------
if __name__ == "__main__":
    # Module hyper-params (emb_dim is unused by the PyTorch module's forward).
    emb_dim = 32
    d_model = 32
    output_dim = 64

    key = jax.random.PRNGKey(0)
    k_enc, k_w = jax.random.split(key)
    enc = jax.random.normal(k_enc, (2, 8, d_model), dtype=jnp.float32)

    # Deterministic xavier_uniform-style init for nn.Linear(d_model, output_dim, bias=False)
    limit = (6.0 / (d_model + output_dim)) ** 0.5
    weight = jax.random.uniform(
        k_w, (output_dim, d_model), dtype=jnp.float32, minval=-limit, maxval=limit
    )

    ref = enc @ weight.T

    # Path 1: native nn.Linear weight layout (transpose folded into the
    # contraction).  force_pallas exercises the kernel at this toy size; real
    # callers at tiny sizes fall back to one fused XLA matmul.
    out1 = jax.block_until_ready(generater_forward(enc, weight, force_pallas=True))
    assert out1.shape == (2, 8, output_dim)
    assert jnp.allclose(out1, ref, atol=1e-5, rtol=1e-5)

    # Path 2: one-time prepared (pre-transposed) weight -- the recommended
    # cached layout.  (Use compute_dtype=jnp.bfloat16 at realistic sizes for
    # full MXU rate; kept f32 here for an exact check.)
    w_prep = prepare_weight(weight, compute_dtype=None, transpose=True)
    out2 = jax.block_until_ready(
        generater_forward(enc, w_prep, weight_is_transposed=True, force_pallas=True))
    assert jnp.allclose(out2, ref, atol=1e-5, rtol=1e-5)

    print("KERNEL_OK")
</pallas_src>

<mosaic_0001>
module attributes {stable_mosaic.version = 11 : i64} {
  func.func @_linear_kernel(%arg0: i32, %arg1: i32, %arg2: i32, %arg3: memref<16x32xf32, #tpu.memory_space<vmem>>, %arg4: memref<64x32xf32, #tpu.memory_space<vmem>>, %arg5: memref<16x64xf32, #tpu.memory_space<vmem>>) attributes {dimension_semantics = [#tpu.dimension_semantics<arbitrary>, #tpu.dimension_semantics<parallel>, #tpu.dimension_semantics<arbitrary>], iteration_bounds = array<i64: 1, 1, 1>, scalar_prefetch = 0 : i64, scratch_operands = 0 : i64, tpu.core_type = #tpu.core_type<tc>, window_params = [{transform_indices = @transform_0, window_bounds = array<i64: 16, 32>}, {transform_indices = @transform_1, window_bounds = array<i64: 64, 32>}, {transform_indices = @transform_2, window_bounds = array<i64: 16, 64>}]} {
    %c0 = arith.constant 0 : index
    %c0_0 = arith.constant 0 : index
    %0 = vector.load %arg3[%c0, %c0_0] : memref<16x32xf32, #tpu.memory_space<vmem>>, vector<16x32xf32>
    %c0_1 = arith.constant 0 : index
    %c0_2 = arith.constant 0 : index
    %1 = vector.load %arg4[%c0_1, %c0_2] : memref<64x32xf32, #tpu.memory_space<vmem>>, vector<64x32xf32>
    %cst = arith.constant dense<0.000000e+00> : vector<16x64xf32>
    %2 = tpu.matmul %0, %1, %cst {dimension_numbers = #tpu.dot_dimension_numbers<[1], [1], [0], [0], [0, 0, 1, 0], [], []>} : vector<16x32xf32>, vector<64x32xf32>, vector<16x64xf32> -> vector<16x64xf32>
    %c0_3 = arith.constant 0 : index
    %c0_4 = arith.constant 0 : index
    %3 = vector.load %arg5[%c0_3, %c0_4] : memref<16x64xf32, #tpu.memory_space<vmem>>, vector<16x64xf32>
    tpu.vector_store %arg5[%c0_3, %c0_4], %2 {strides = array<i32>} : memref<16x64xf32, #tpu.memory_space<vmem>>, vector<16x64xf32>,
    return
  }
  func.func @transform_0(%arg0: i32, %arg1: i32, %arg2: i32) -> (i32, i32) {
    %c0_i32 = arith.constant 0 : i32
    %c0_i32_0 = arith.constant 0 : i32
    return %arg0, %c0_i32 : i32, i32
  }
  func.func @transform_1(%arg0: i32, %arg1: i32, %arg2: i32) -> (i32, i32) {
    %c0_i32 = arith.constant 0 : i32
    return %arg1, %arg2 : i32, i32
  }
  func.func @transform_2(%arg0: i32, %arg1: i32, %arg2: i32) -> (i32, i32) {
    %c0_i32 = arith.constant 0 : i32
    return %arg0, %arg1 : i32, i32
  }
}

</mosaic_0001>

<bundles_post_ra>
// kernel: tpu_custom_call.1
= control target key start
LH: loop header
LB: loop body
LE: loop exit
PB: predicated region body
PF: predicated region fallthrough
CT: control target
= control target key end

     0   :  { %vm22_vm0 = vcmask 261120   ;;  %s280_s0 = inlined_call_operand.vmem [shape: f32[16,32], index: 0, kind: input, shape index: {}]   ;;  %s281_s1 = inlined_call_operand.vmem [shape: f32[64,32], index: 1, kind: input, shape index: {}]   ;;  %s282_s2 = inlined_call_operand.hbm [shape: f32[16,64], index: 2, kind: output, shape index: {}]  }
   0x1   :  { %v21_v0 = vld [vmem:[%s281_s1 + $0x38] sm:$0xff]  ;;  %v20_v1 = vld [vmem:[%s281_s1 + $0x30] sm:$0xff]  ;;  %v12_v2 = vld [vmem:[%s280_s0] sm:$0xff] }
   0x2   :  { %167 = vmatprep.subr.msk.mxu0 %vm22_vm0, %v21_v0  ;;  %183 = vmatprep.mubr.msk.f32.mxu0 %vm22_vm0, %v12_v2 }
   0x3   :  { %168 = vmatpush3.xpose.msk.msra.mxu0 %vm22_vm0, %v21_v0 }
   0x4   :  { %169 = vmatprep.subr.msk.mxu0 %vm22_vm0, %v20_v1 }
   0x5   :  { %7 = vsyncpa [#allocation3], 0  ;;  %v19_v3 = vld [vmem:[%s281_s1 + $0x28] sm:$0xff]  ;;  %v18_v4 = vld [vmem:[%s281_s1 + $0x20] sm:$0xff]  ;;  %s211_s29 = smov [#allocation2]   ;;  %vm128_vm1 = vcmask 523264  }
   0x6   :  { %v17_v5 = vld [vmem:[%s281_s1 + $0x18] sm:$0xff]  ;;  %v16_v6 = vld [vmem:[%s281_s1 + $0x10] sm:$0xff]  ;;  %v15_v7 = vld [vmem:[%s281_s1 + $0x8] sm:$0xff]  ;;  %s136_s30 = sshll.u32 %s211_s29, 4  ;;  %s137_s30 = int_to_ptr.vmem [resolvable:$true] %s136_s30 }
   0x7   :  { %170 = vmatpush3.xpose.msk.msra.mxu0 %vm22_vm0, %v20_v1  ;;  %v14_v8 = vld [vmem:[%s281_s1] sm:$0xff]  ;;  %v13_v9 = vld [vmem:[%s280_s0 + $0x8] sm:$0xff]  ;;  %s189_s1 = scalar_lea.vmem %s137_s30, 256  ;;  %p194_p1 = scmp.lt.s32.totalorder %s137_s30, %s137_s30 }
   0x8   :  { %171 = vmatprep.subr.msk.mxu0 %vm22_vm0, %v19_v3  ;;  %p190_p0 = scmp.ne.s32.totalorder %s137_s30, %s189_s1  ;;  %p195_p2 = scmp.lt.s32.totalorder %s189_s1, %s189_s1 }
   0xa   :  { %p196_p3 = por %p195_p2, %p194_p1 }
   0xb   :  { %172 = vmatpush3.xpose.msk.msra.mxu0 %vm22_vm0, %v19_v3 }
   0xc   :  { %173 = vmatprep.subr.msk.mxu0 %vm22_vm0, %v18_v4  ;;  %p197_p4 = pnand %p196_p3, %p190_p0 }
   0xf   :  { %174 = vmatpush3.xpose.msk.msra.mxu0 %vm22_vm0, %v18_v4 }
  0x10   :  { %175 = vmatprep.subr.msk.mxu0 %vm22_vm0, %v17_v5 }
  0x13   :  { %176 = vmatpush3.xpose.msk.msra.mxu0 %vm22_vm0, %v17_v5 }
  0x14   :  { %177 = vmatprep.subr.msk.mxu0 %vm22_vm0, %v16_v6 }
  0x17   :  { %178 = vmatpush3.xpose.msk.msra.mxu0 %vm22_vm0, %v16_v6 }
  0x18   :  { %179 = vmatprep.subr.msk.mxu0 %vm22_vm0, %v15_v7 }
  0x1b   :  { %180 = vmatpush3.xpose.msk.msra.mxu0 %vm22_vm0, %v15_v7 }
  0x1c   :  { %181 = vmatprep.subr.msk.mxu0 %vm22_vm0, %v14_v8 }
  0x1f   :  { %182 = vmatpush3.xpose.msk.msra.mxu0 %vm22_vm0, %v14_v8 }
  0x22   :  { %184 = vmatmul.mubr.msk.f32.vlgmr.msra.gmra.mxu0 %vm22_vm0, %v13_v9 }
  0xe2   :  { %v185_v10 = vpop.f32.mrf.mxu0 }
  0xe3   :  { %130 = vst.msk [vmem:[#allocation2 + $0x8] sm:$0xff] %vm128_vm1, %v185_v10 }
  0xe4   :  { %v119_v11 = vpop.f32.mrf.mxu0 }
  0xe5   :  { %129 = vst.msk [vmem:[#allocation2] sm:$0xff] %vm128_vm1, %v119_v11 }
  0xe6   :  { %200 = shalt.err (!%p197_p4)
}
  0xe7   :  { %s212_s3 = smov 128   ;;  %s213_s4 = smov 8  }
  0xe8   :  { %142 = dma.vmem_to_hbm [thread:$0]  %s137_s30, 256, %s282_s2, [#allocation3], %s212_s3, %s212_s3, %s213_s4  }
  0xe9   :  { %209 = dma.done.wait [#allocation3], 256  }
  0xea   :  { %210 = vsyncadd [#allocation3], 4294967040 }
  0xeb   :  { %146 = vsyncpa [#allocation3], 1 }

</bundles_post_ra>
